<compile_context>
chip_gen: v6e
topology: v6e:2x2x1
jax: 0.10.0
libtpu: 0.0.40
codegen_flags: <defaults>
</compile_context>

<pallas_src>
import jax
import jax.numpy as jnp
from jax.experimental import pallas as pl
from jax.experimental.pallas import tpu as pltpu

B, D, H = 8, 32, 32   # batch, input feature dim, hidden dim (D == H so residual adds line up)


def _sigmoid(x):
    # 1 / (1 + exp(-x)): exp on the EUP, approx reciprocal also on the EUP (VALU stays free).
    return pl.reciprocal(1.0 + jnp.exp(-x), approx=True)


# ---------------------------------------------------------------------------- fused kernel
def lspmnet_kernel(x1_ref, x2_ref, x3_ref, h0_ref, c0_ref,
                   w_g_ref, b_g_ref, w_d1_ref, b_d1_ref, w_d2_ref, b_d2_ref,
                   out_ref, pack_scr):
    """Entire LSPMnet forward (3 LSTM steps + decoder1 + decoder2 + out3 add) in one kernel.

    pack_scr is a (B, 128) f32 VMEM scratch used to build concatenated matmul LHS operands
    ([x|h], [h|x3|c], [gated|o1]) without any HBM round-trips.
    """
    # Hoisted, resident across all three LSTM steps.
    w_g = w_g_ref[...]                                          # (D+H, 4H) bf16
    b_g = jnp.broadcast_to(b_g_ref[...], (B, 4 * H))            # bias broadcast hoisted
    lane = jax.lax.broadcasted_iota(jnp.int32, (B, 4 * H), 1)
    g_mask = (lane >= 2 * H) & (lane < 3 * H)                   # lanes of the "g" gate block

    x1 = x1_ref[...]
    x3 = x3_ref[...]
    h = h0_ref[...]
    c = c0_ref[...]

    # ---- EncoderLSTM: 3 unrolled steps, one fused [x | h] @ [wx ; wh] matmul per step ----
    for x_ref in (x1_ref, x2_ref, x3_ref):
        pack_scr[:, 0:D] = x_ref[...]
        pack_scr[:, D:D + H] = h
        xh = pack_scr[:, 0:D + H].astype(jnp.bfloat16)          # (B, 64) bf16 MXU operand
        gates = jnp.dot(xh, w_g, preferred_element_type=jnp.float32) + b_g   # (B, 128) f32
        # Full-width EUP calls + one select instead of four quarter-vreg activations.
        s = _sigmoid(gates)
        t = jnp.tanh(gates)
        act = jnp.where(g_mask, t, s)                           # i | f | g | o
        c = act[:, H:2 * H] * c + act[:, 0:H] * act[:, 2 * H:3 * H]
        h = act[:, 3 * H:4 * H] * jnp.tanh(c)

    # ---- Decoder1st + the o4 head of Decoder2nd: one wide matmul on [h | x3 | c] ---------
    #   columns of w_d1: [ o0 | Ind | o1 | o4 ]
    pack_scr[:, 0:H] = h
    pack_scr[:, H:2 * H] = x3
    pack_scr[:, 2 * H:3 * H] = c
    hxc = pack_scr[:, 0:3 * H].astype(jnp.bfloat16)             # (B, 96) bf16
    d1 = jnp.dot(hxc, w_d1_ref[...], preferred_element_type=jnp.float32) + b_d1_ref[...]
    o0 = jnp.maximum(d1[:, 0 * D:1 * D], 0.0)
    ind = _sigmoid(d1[:, 1 * D:2 * D])
    o1 = jnp.tanh(d1[:, 2 * D:3 * D])
    o4 = _sigmoid(d1[:, 3 * D:4 * D])

    # ---- Decoder2nd remaining heads: block-diagonal matmul on [o0*Ind + x1 | o1] ---------
    pack_scr[:, 0:D] = o0 * ind + x1                            # gated residual
    pack_scr[:, D:2 * D] = o1
    lhs2 = pack_scr[:, 0:2 * D].astype(jnp.bfloat16)            # (B, 64) bf16
    d2 = jnp.dot(lhs2, w_d2_ref[...], preferred_element_type=jnp.float32) + b_d2_ref[...]

    # ---- single lane-dense (B, 128) output slab: [ out0 | out1 | Ind | out3 ] ------------
    out_ref[:, 0 * D:1 * D] = jnp.maximum(d2[:, 0:D], 0.0)      # out0 = relu head
    out_ref[:, 1 * D:2 * D] = jnp.tanh(d2[:, D:2 * D])          # out1 = tanh head
    out_ref[:, 2 * D:3 * D] = ind                               # Ind passed through
    out_ref[:, 3 * D:4 * D] = o4 + ind                          # out3 = o4 + Ind (fused)


# ---------------------------------------------------------------------------- params
def init_params():
    key = jax.random.PRNGKey(42)
    ks = jax.random.split(key, 12)
    s = 0.1
    nrm = lambda k, shape: s * jax.random.normal(k, shape, jnp.float32)

    # Raw per-module weights (same semantics as the reconstructed modules).
    wx = nrm(ks[0], (D, 4 * H))
    wh = nrm(ks[1], (H, 4 * H))
    b_g = nrm(ks[2], (1, 4 * H))
    w_o0 = nrm(ks[3], (H, D)); b_o0 = nrm(ks[4], (1, D))
    w_ind = nrm(ks[5], (H, D)); b_ind = nrm(ks[6], (1, D))
    w_h1 = nrm(ks[7], (H, D)); w_x1 = nrm(ks[8], (D, D)); b_o1 = nrm(ks[9], (1, D))
    w0 = nrm(ks[10], (D, D)); b0 = jnp.zeros((1, D), jnp.float32)
    w1 = nrm(ks[11], (D, D)); b1 = jnp.zeros((1, D), jnp.float32)
    w4h = nrm(jax.random.PRNGKey(7), (H, D))
    w4c = nrm(jax.random.PRNGKey(8), (H, D))
    b4 = jnp.zeros((1, D), jnp.float32)

    Z = jnp.zeros((D, D), jnp.float32)

    # Encoder: stack [wx ; wh] so each LSTM step is one (B,64)@(64,128) bf16 matmul.
    w_g = jnp.concatenate([wx, wh], axis=0).astype(jnp.bfloat16)                 # (64, 128)

    # Decoder1 + o4 head: LHS [h | x3 | c] (B,96), heads [o0 | Ind | o1 | o4] (96,128).
    w_d1 = jnp.concatenate([
        jnp.concatenate([w_o0, Z,     w_h1, w4h], axis=1),   # rows driven by h
        jnp.concatenate([Z,    Z,     w_x1, Z  ], axis=1),   # rows driven by x3
        jnp.concatenate([Z,    w_ind, Z,    w4c], axis=1),   # rows driven by c
    ], axis=0).astype(jnp.bfloat16)                                              # (96, 128)
    b_d1 = jnp.concatenate([b_o0, b_ind, b_o1, b4], axis=1)                      # (1, 128)

    # Decoder2: block-diagonal so out0 and out1 come from one (B,64)@(64,64) matmul.
    w_d2 = jnp.concatenate([
        jnp.concatenate([w0, Z], axis=1),
        jnp.concatenate([Z, w1], axis=1),
    ], axis=0).astype(jnp.bfloat16)                                              # (64, 64)
    b_d2 = jnp.concatenate([b0, b1], axis=1)                                     # (1, 64)

    return {"w_g": w_g, "b_g": b_g,
            "w_d1": w_d1, "b_d1": b_d1,
            "w_d2": w_d2, "b_d2": b_d2}


# ---------------------------------------------------------------------------- forward
def lspmnet_forward(params, x1, x2, x3, h0, c0):
    vmem = pl.BlockSpec(memory_space=pltpu.MemorySpace.VMEM)   # whole-array, resident in VMEM
    out = pl.pallas_call(
        lspmnet_kernel,
        out_shape=jax.ShapeDtypeStruct((B, 4 * D), jnp.float32),
        in_specs=[vmem] * 11,
        out_specs=vmem,
        scratch_shapes=[pltpu.VMEM((B, 4 * H), jnp.float32)],
    )(x1, x2, x3, h0, c0,
      params["w_g"], params["b_g"],
      params["w_d1"], params["b_d1"],
      params["w_d2"], params["b_d2"])

    out0 = out[:, 0 * D:1 * D]
    out1 = out[:, 1 * D:2 * D]
    Ind = out[:, 2 * D:3 * D]
    out3 = out[:, 3 * D:4 * D]
    return out0, out1, Ind, out3


# ---------------------------------------------------------------------------- main
if __name__ == "__main__":
    params = init_params()

    key = jax.random.PRNGKey(0)
    k1, k2, k3, kh, kc = jax.random.split(key, 5)
    x1 = jax.random.normal(k1, (B, D), jnp.float32)
    x2 = jax.random.normal(k2, (B, D), jnp.float32)
    x3 = jax.random.normal(k3, (B, D), jnp.float32)
    h0 = jax.random.normal(kh, (B, H), jnp.float32)
    c0 = jax.random.normal(kc, (B, H), jnp.float32)

    out0, out1, Ind, out3 = jax.jit(lspmnet_forward)(params, x1, x2, x3, h0, c0)
    jax.block_until_ready((out0, out1, Ind, out3))

    assert out0.shape == (B, D) and out1.shape == (B, D)
    assert Ind.shape == (B, D) and out3.shape == (B, D)
    assert all(bool(jnp.all(jnp.isfinite(o))) for o in (out0, out1, Ind, out3))
    print("KERNEL_OK")
</pallas_src>

<mosaic_0001>
module attributes {stable_mosaic.version = 11 : i64} {
  func.func @lspmnet_kernel(%arg0: memref<8x32xf32, #tpu.memory_space<vmem>>, %arg1: memref<8x32xf32, #tpu.memory_space<vmem>>, %arg2: memref<8x32xf32, #tpu.memory_space<vmem>>, %arg3: memref<8x32xf32, #tpu.memory_space<vmem>>, %arg4: memref<8x32xf32, #tpu.memory_space<vmem>>, %arg5: memref<64x128xbf16, #tpu.memory_space<vmem>>, %arg6: memref<1x128xf32, #tpu.memory_space<vmem>>, %arg7: memref<96x128xbf16, #tpu.memory_space<vmem>>, %arg8: memref<1x128xf32, #tpu.memory_space<vmem>>, %arg9: memref<64x64xbf16, #tpu.memory_space<vmem>>, %arg10: memref<1x64xf32, #tpu.memory_space<vmem>>, %arg11: memref<8x128xf32, #tpu.memory_space<vmem>>, %arg12: memref<8x128xf32, #tpu.memory_space<vmem>>) attributes {dimension_semantics = [], scalar_prefetch = 0 : i64, scratch_operands = 1 : i64, tpu.core_type = #tpu.core_type<tc>} {
    %c0 = arith.constant 0 : index
    %c0_0 = arith.constant 0 : index
    %0 = vector.load %arg5[%c0, %c0_0] : memref<64x128xbf16, #tpu.memory_space<vmem>>, vector<64x128xbf16>
    %c0_1 = arith.constant 0 : index
    %c0_2 = arith.constant 0 : index
    %1 = vector.load %arg6[%c0_1, %c0_2] : memref<1x128xf32, #tpu.memory_space<vmem>>, vector<1x128xf32>
    %2 = vector.shape_cast %1 : vector<1x128xf32> to vector<1x128xf32>
    %3 = vector.broadcast %2 : vector<1x128xf32> to vector<8x128xf32>
    %4 = tpu.iota {dimensions = array<i32: 1>} : vector<8x128xi32>
    %c64_i32 = arith.constant 64 : i32
    %5 = vector.broadcast %c64_i32 : i32 to vector<8x128xi32>
    %6 = arith.cmpi sge, %4, %5 : vector<8x128xi32>
    %c96_i32 = arith.constant 96 : i32
    %7 = vector.broadcast %c96_i32 : i32 to vector<8x128xi32>
    %8 = arith.cmpi slt, %4, %7 : vector<8x128xi32>
    %9 = arith.andi %6, %8 : vector<8x128xi1>
    %c0_3 = arith.constant 0 : index
    %c0_4 = arith.constant 0 : index
    %10 = vector.load %arg0[%c0_3, %c0_4] : memref<8x32xf32, #tpu.memory_space<vmem>>, vector<8x32xf32>
    %c0_5 = arith.constant 0 : index
    %c0_6 = arith.constant 0 : index
    %11 = vector.load %arg2[%c0_5, %c0_6] : memref<8x32xf32, #tpu.memory_space<vmem>>, vector<8x32xf32>
    %c0_7 = arith.constant 0 : index
    %c0_8 = arith.constant 0 : index
    %12 = vector.load %arg3[%c0_7, %c0_8] : memref<8x32xf32, #tpu.memory_space<vmem>>, vector<8x32xf32>
    %c0_9 = arith.constant 0 : index
    %c0_10 = arith.constant 0 : index
    %13 = vector.load %arg4[%c0_9, %c0_10] : memref<8x32xf32, #tpu.memory_space<vmem>>, vector<8x32xf32>
    %c0_11 = arith.constant 0 : index
    %c0_12 = arith.constant 0 : index
    %14 = vector.load %arg0[%c0_11, %c0_12] : memref<8x32xf32, #tpu.memory_space<vmem>>, vector<8x32xf32>
    %c0_13 = arith.constant 0 : index
    %c0_14 = arith.constant 0 : index
    %15 = vector.load %arg12[%c0_13, %c0_14] : memref<8x128xf32, #tpu.memory_space<vmem>>, vector<8x32xf32>
    tpu.vector_store %arg12[%c0_13, %c0_14], %14 {strides = array<i32>} : memref<8x128xf32, #tpu.memory_space<vmem>>, vector<8x32xf32>,
    %c0_15 = arith.constant 0 : index
    %c32 = arith.constant 32 : index
    %16 = vector.load %arg12[%c0_15, %c32] : memref<8x128xf32, #tpu.memory_space<vmem>>, vector<8x32xf32>
    tpu.vector_store %arg12[%c0_15, %c32], %12 {strides = array<i32>} : memref<8x128xf32, #tpu.memory_space<vmem>>, vector<8x32xf32>,
    %c0_16 = arith.constant 0 : index
    %c0_17 = arith.constant 0 : index
    %17 = vector.load %arg12[%c0_16, %c0_17] : memref<8x128xf32, #tpu.memory_space<vmem>>, vector<8x64xf32>
    %18 = arith.truncf %17 : vector<8x64xf32> to vector<8x64xbf16>
    %cst = arith.constant dense<0.000000e+00> : vector<8x128xf32>
    %19 = tpu.matmul %18, %0, %cst {dimension_numbers = #tpu.dot_dimension_numbers<[1], [0], [0], [1], [0, 0, 1, 1], [], []>} : vector<8x64xbf16>, vector<64x128xbf16>, vector<8x128xf32> -> vector<8x128xf32>
    %20 = arith.addf %19, %3 : vector<8x128xf32>
    %cst_18 = arith.constant 0.000000e+00 : f32
    %21 = vector.broadcast %cst_18 : f32 to vector<8x128xf32>
    %22 = arith.subf %21, %20 : vector<8x128xf32>
    %23 = math.exp %22 : vector<8x128xf32>
    %cst_19 = arith.constant 1.000000e+00 : f32
    %24 = vector.broadcast %cst_19 : f32 to vector<8x128xf32>
    %25 = arith.addf %24, %23 : vector<8x128xf32>
    %26 = tpu.reciprocal %25 {approx = true} : vector<8x128xf32> -> vector<8x128xf32>
    %27 = math.tanh %20 : vector<8x128xf32>
    %28 = arith.select %9, %27, %26 : vector<8x128xi1>, vector<8x128xf32>
    %29 = vector.extract_strided_slice %28 {offsets = [0, 32], sizes = [8, 32], strides = [1, 1]} : vector<8x128xf32> to vector<8x32xf32>
    %30 = arith.mulf %29, %13 : vector<8x32xf32>
    %31 = vector.extract_strided_slice %28 {offsets = [0, 0], sizes = [8, 32], strides = [1, 1]} : vector<8x128xf32> to vector<8x32xf32>
    %32 = vector.extract_strided_slice %28 {offsets = [0, 64], sizes = [8, 32], strides = [1, 1]} : vector<8x128xf32> to vector<8x32xf32>
    %33 = arith.mulf %31, %32 : vector<8x32xf32>
    %34 = arith.addf %30, %33 : vector<8x32xf32>
    %35 = vector.extract_strided_slice %28 {offsets = [0, 96], sizes = [8, 32], strides = [1, 1]} : vector<8x128xf32> to vector<8x32xf32>
    %36 = math.tanh %34 : vector<8x32xf32>
    %37 = arith.mulf %35, %36 : vector<8x32xf32>
    %c0_20 = arith.constant 0 : index
    %c0_21 = arith.constant 0 : index
    %38 = vector.load %arg1[%c0_20, %c0_21] : memref<8x32xf32, #tpu.memory_space<vmem>>, vector<8x32xf32>
    %c0_22 = arith.constant 0 : index
    %c0_23 = arith.constant 0 : index
    %39 = vector.load %arg12[%c0_22, %c0_23] : memref<8x128xf32, #tpu.memory_space<vmem>>, vector<8x32xf32>
    tpu.vector_store %arg12[%c0_22, %c0_23], %38 {strides = array<i32>} : memref<8x128xf32, #tpu.memory_space<vmem>>, vector<8x32xf32>,
    %c0_24 = arith.constant 0 : index
    %c32_25 = arith.constant 32 : index
    %40 = vector.load %arg12[%c0_24, %c32_25] : memref<8x128xf32, #tpu.memory_space<vmem>>, vector<8x32xf32>
    tpu.vector_store %arg12[%c0_24, %c32_25], %37 {strides = array<i32>} : memref<8x128xf32, #tpu.memory_space<vmem>>, vector<8x32xf32>,
    %c0_26 = arith.constant 0 : index
    %c0_27 = arith.constant 0 : index
    %41 = vector.load %arg12[%c0_26, %c0_27] : memref<8x128xf32, #tpu.memory_space<vmem>>, vector<8x64xf32>
    %42 = arith.truncf %41 : vector<8x64xf32> to vector<8x64xbf16>
    %cst_28 = arith.constant dense<0.000000e+00> : vector<8x128xf32>
    %43 = tpu.matmul %42, %0, %cst_28 {dimension_numbers = #tpu.dot_dimension_numbers<[1], [0], [0], [1], [0, 0, 1, 1], [], []>} : vector<8x64xbf16>, vector<64x128xbf16>, vector<8x128xf32> -> vector<8x128xf32>
    %44 = arith.addf %43, %3 : vector<8x128xf32>
    %cst_29 = arith.constant 0.000000e+00 : f32
    %45 = vector.broadcast %cst_29 : f32 to vector<8x128xf32>
    %46 = arith.subf %45, %44 : vector<8x128xf32>
    %47 = math.exp %46 : vector<8x128xf32>
    %cst_30 = arith.constant 1.000000e+00 : f32
    %48 = vector.broadcast %cst_30 : f32 to vector<8x128xf32>
    %49 = arith.addf %48, %47 : vector<8x128xf32>
    %50 = tpu.reciprocal %49 {approx = true} : vector<8x128xf32> -> vector<8x128xf32>
    %51 = math.tanh %44 : vector<8x128xf32>
    %52 = arith.select %9, %51, %50 : vector<8x128xi1>, vector<8x128xf32>
    %53 = vector.extract_strided_slice %52 {offsets = [0, 32], sizes = [8, 32], strides = [1, 1]} : vector<8x128xf32> to vector<8x32xf32>
    %54 = arith.mulf %53, %34 : vector<8x32xf32>
    %55 = vector.extract_strided_slice %52 {offsets = [0, 0], sizes = [8, 32], strides = [1, 1]} : vector<8x128xf32> to vector<8x32xf32>
    %56 = vector.extract_strided_slice %52 {offsets = [0, 64], sizes = [8, 32], strides = [1, 1]} : vector<8x128xf32> to vector<8x32xf32>
    %57 = arith.mulf %55, %56 : vector<8x32xf32>
    %58 = arith.addf %54, %57 : vector<8x32xf32>
    %59 = vector.extract_strided_slice %52 {offsets = [0, 96], sizes = [8, 32], strides = [1, 1]} : vector<8x128xf32> to vector<8x32xf32>
    %60 = math.tanh %58 : vector<8x32xf32>
    %61 = arith.mulf %59, %60 : vector<8x32xf32>
    %c0_31 = arith.constant 0 : index
    %c0_32 = arith.constant 0 : index
    %62 = vector.load %arg2[%c0_31, %c0_32] : memref<8x32xf32, #tpu.memory_space<vmem>>, vector<8x32xf32>
    %c0_33 = arith.constant 0 : index
    %c0_34 = arith.constant 0 : index
    %63 = vector.load %arg12[%c0_33, %c0_34] : memref<8x128xf32, #tpu.memory_space<vmem>>, vector<8x32xf32>
    tpu.vector_store %arg12[%c0_33, %c0_34], %62 {strides = array<i32>} : memref<8x128xf32, #tpu.memory_space<vmem>>, vector<8x32xf32>,
    %c0_35 = arith.constant 0 : index
    %c32_36 = arith.constant 32 : index
    %64 = vector.load %arg12[%c0_35, %c32_36] : memref<8x128xf32, #tpu.memory_space<vmem>>, vector<8x32xf32>
    tpu.vector_store %arg12[%c0_35, %c32_36], %61 {strides = array<i32>} : memref<8x128xf32, #tpu.memory_space<vmem>>, vector<8x32xf32>,
    %c0_37 = arith.constant 0 : index
    %c0_38 = arith.constant 0 : index
    %65 = vector.load %arg12[%c0_37, %c0_38] : memref<8x128xf32, #tpu.memory_space<vmem>>, vector<8x64xf32>
    %66 = arith.truncf %65 : vector<8x64xf32> to vector<8x64xbf16>
    %cst_39 = arith.constant dense<0.000000e+00> : vector<8x128xf32>
    %67 = tpu.matmul %66, %0, %cst_39 {dimension_numbers = #tpu.dot_dimension_numbers<[1], [0], [0], [1], [0, 0, 1, 1], [], []>} : vector<8x64xbf16>, vector<64x128xbf16>, vector<8x128xf32> -> vector<8x128xf32>
    %68 = arith.addf %67, %3 : vector<8x128xf32>
    %cst_40 = arith.constant 0.000000e+00 : f32
    %69 = vector.broadcast %cst_40 : f32 to vector<8x128xf32>
    %70 = arith.subf %69, %68 : vector<8x128xf32>
    %71 = math.exp %70 : vector<8x128xf32>
    %cst_41 = arith.constant 1.000000e+00 : f32
    %72 = vector.broadcast %cst_41 : f32 to vector<8x128xf32>
    %73 = arith.addf %72, %71 : vector<8x128xf32>
    %74 = tpu.reciprocal %73 {approx = true} : vector<8x128xf32> -> vector<8x128xf32>
    %75 = math.tanh %68 : vector<8x128xf32>
    %76 = arith.select %9, %75, %74 : vector<8x128xi1>, vector<8x128xf32>
    %77 = vector.extract_strided_slice %76 {offsets = [0, 32], sizes = [8, 32], strides = [1, 1]} : vector<8x128xf32> to vector<8x32xf32>
    %78 = arith.mulf %77, %58 : vector<8x32xf32>
    %79 = vector.extract_strided_slice %76 {offsets = [0, 0], sizes = [8, 32], strides = [1, 1]} : vector<8x128xf32> to vector<8x32xf32>
    %80 = vector.extract_strided_slice %76 {offsets = [0, 64], sizes = [8, 32], strides = [1, 1]} : vector<8x128xf32> to vector<8x32xf32>
    %81 = arith.mulf %79, %80 : vector<8x32xf32>
    %82 = arith.addf %78, %81 : vector<8x32xf32>
    %83 = vector.extract_strided_slice %76 {offsets = [0, 96], sizes = [8, 32], strides = [1, 1]} : vector<8x128xf32> to vector<8x32xf32>
    %84 = math.tanh %82 : vector<8x32xf32>
    %85 = arith.mulf %83, %84 : vector<8x32xf32>
    %c0_42 = arith.constant 0 : index
    %c0_43 = arith.constant 0 : index
    %86 = vector.load %arg12[%c0_42, %c0_43] : memref<8x128xf32, #tpu.memory_space<vmem>>, vector<8x32xf32>
    tpu.vector_store %arg12[%c0_42, %c0_43], %85 {strides = array<i32>} : memref<8x128xf32, #tpu.memory_space<vmem>>, vector<8x32xf32>,
    %c0_44 = arith.constant 0 : index
    %c32_45 = arith.constant 32 : index
    %87 = vector.load %arg12[%c0_44, %c32_45] : memref<8x128xf32, #tpu.memory_space<vmem>>, vector<8x32xf32>
    tpu.vector_store %arg12[%c0_44, %c32_45], %11 {strides = array<i32>} : memref<8x128xf32, #tpu.memory_space<vmem>>, vector<8x32xf32>,
    %c0_46 = arith.constant 0 : index
    %c64 = arith.constant 64 : index
    %88 = vector.load %arg12[%c0_46, %c64] : memref<8x128xf32, #tpu.memory_space<vmem>>, vector<8x32xf32>
    tpu.vector_store %arg12[%c0_46, %c64], %82 {strides = array<i32>} : memref<8x128xf32, #tpu.memory_space<vmem>>, vector<8x32xf32>,
    %c0_47 = arith.constant 0 : index
    %c0_48 = arith.constant 0 : index
    %89 = vector.load %arg12[%c0_47, %c0_48] : memref<8x128xf32, #tpu.memory_space<vmem>>, vector<8x96xf32>
    %90 = arith.truncf %89 : vector<8x96xf32> to vector<8x96xbf16>
    %c0_49 = arith.constant 0 : index
    %c0_50 = arith.constant 0 : index
    %91 = vector.load %arg7[%c0_49, %c0_50] : memref<96x128xbf16, #tpu.memory_space<vmem>>, vector<96x128xbf16>
    %cst_51 = arith.constant dense<0.000000e+00> : vector<8x128xf32>
    %92 = tpu.matmul %90, %91, %cst_51 {dimension_numbers = #tpu.dot_dimension_numbers<[1], [0], [0], [1], [0, 0, 1, 1], [], []>} : vector<8x96xbf16>, vector<96x128xbf16>, vector<8x128xf32> -> vector<8x128xf32>
    %c0_52 = arith.constant 0 : index
    %c0_53 = arith.constant 0 : index
    %93 = vector.load %arg8[%c0_52, %c0_53] : memref<1x128xf32, #tpu.memory_space<vmem>>, vector<1x128xf32>
    %94 = vector.broadcast %93 : vector<1x128xf32> to vector<8x128xf32>
    %95 = arith.addf %92, %94 : vector<8x128xf32>
    %96 = vector.extract_strided_slice %95 {offsets = [0, 0], sizes = [8, 32], strides = [1, 1]} : vector<8x128xf32> to vector<8x32xf32>
    %cst_54 = arith.constant 0.000000e+00 : f32
    %97 = vector.broadcast %cst_54 : f32 to vector<8x32xf32>
    %98 = arith.maximumf %96, %97 : vector<8x32xf32>
    %99 = vector.extract_strided_slice %95 {offsets = [0, 32], sizes = [8, 32], strides = [1, 1]} : vector<8x128xf32> to vector<8x32xf32>
    %cst_55 = arith.constant 0.000000e+00 : f32
    %100 = vector.broadcast %cst_55 : f32 to vector<8x32xf32>
    %101 = arith.subf %100, %99 : vector<8x32xf32>
    %102 = math.exp %101 : vector<8x32xf32>
    %cst_56 = arith.constant 1.000000e+00 : f32
    %103 = vector.broadcast %cst_56 : f32 to vector<8x32xf32>
    %104 = arith.addf %103, %102 : vector<8x32xf32>
    %105 = tpu.reciprocal %104 {approx = true} : vector<8x32xf32> -> vector<8x32xf32>
    %106 = vector.extract_strided_slice %95 {offsets = [0, 64], sizes = [8, 32], strides = [1, 1]} : vector<8x128xf32> to vector<8x32xf32>
    %107 = math.tanh %106 : vector<8x32xf32>
    %108 = vector.extract_strided_slice %95 {offsets = [0, 96], sizes = [8, 32], strides = [1, 1]} : vector<8x128xf32> to vector<8x32xf32>
    %cst_57 = arith.constant 0.000000e+00 : f32
    %109 = vector.broadcast %cst_57 : f32 to vector<8x32xf32>
    %110 = arith.subf %109, %108 : vector<8x32xf32>
    %111 = math.exp %110 : vector<8x32xf32>
    %cst_58 = arith.constant 1.000000e+00 : f32
    %112 = vector.broadcast %cst_58 : f32 to vector<8x32xf32>
    %113 = arith.addf %112, %111 : vector<8x32xf32>
    %114 = tpu.reciprocal %113 {approx = true} : vector<8x32xf32> -> vector<8x32xf32>
    %115 = arith.mulf %98, %105 : vector<8x32xf32>
    %116 = arith.addf %115, %10 : vector<8x32xf32>
    %c0_59 = arith.constant 0 : index
    %c0_60 = arith.constant 0 : index
    %117 = vector.load %arg12[%c0_59, %c0_60] : memref<8x128xf32, #tpu.memory_space<vmem>>, vector<8x32xf32>
    tpu.vector_store %arg12[%c0_59, %c0_60], %116 {strides = array<i32>} : memref<8x128xf32, #tpu.memory_space<vmem>>, vector<8x32xf32>,
    %c0_61 = arith.constant 0 : index
    %c32_62 = arith.constant 32 : index
    %118 = vector.load %arg12[%c0_61, %c32_62] : memref<8x128xf32, #tpu.memory_space<vmem>>, vector<8x32xf32>
    tpu.vector_store %arg12[%c0_61, %c32_62], %107 {strides = array<i32>} : memref<8x128xf32, #tpu.memory_space<vmem>>, vector<8x32xf32>,
    %c0_63 = arith.constant 0 : index
    %c0_64 = arith.constant 0 : index
    %119 = vector.load %arg12[%c0_63, %c0_64] : memref<8x128xf32, #tpu.memory_space<vmem>>, vector<8x64xf32>
    %120 = arith.truncf %119 : vector<8x64xf32> to vector<8x64xbf16>
    %c0_65 = arith.constant 0 : index
    %c0_66 = arith.constant 0 : index
    %121 = vector.load %arg9[%c0_65, %c0_66] : memref<64x64xbf16, #tpu.memory_space<vmem>>, vector<64x64xbf16>
    %cst_67 = arith.constant dense<0.000000e+00> : vector<8x64xf32>
    %122 = tpu.matmul %120, %121, %cst_67 {dimension_numbers = #tpu.dot_dimension_numbers<[1], [0], [0], [1], [0, 0, 1, 1], [], []>} : vector<8x64xbf16>, vector<64x64xbf16>, vector<8x64xf32> -> vector<8x64xf32>
    %c0_68 = arith.constant 0 : index
    %c0_69 = arith.constant 0 : index
    %123 = vector.load %arg10[%c0_68, %c0_69] : memref<1x64xf32, #tpu.memory_space<vmem>>, vector<1x64xf32>
    %124 = vector.broadcast %123 : vector<1x64xf32> to vector<8x64xf32>
    %125 = arith.addf %122, %124 : vector<8x64xf32>
    %126 = vector.extract_strided_slice %125 {offsets = [0, 0], sizes = [8, 32], strides = [1, 1]} : vector<8x64xf32> to vector<8x32xf32>
    %cst_70 = arith.constant 0.000000e+00 : f32
    %127 = vector.broadcast %cst_70 : f32 to vector<8x32xf32>
    %128 = arith.maximumf %126, %127 : vector<8x32xf32>
    %c0_71 = arith.constant 0 : index
    %c0_72 = arith.constant 0 : index
    %129 = vector.load %arg11[%c0_71, %c0_72] : memref<8x128xf32, #tpu.memory_space<vmem>>, vector<8x32xf32>
    tpu.vector_store %arg11[%c0_71, %c0_72], %128 {strides = array<i32>} : memref<8x128xf32, #tpu.memory_space<vmem>>, vector<8x32xf32>,
    %130 = vector.extract_strided_slice %125 {offsets = [0, 32], sizes = [8, 32], strides = [1, 1]} : vector<8x64xf32> to vector<8x32xf32>
    %131 = math.tanh %130 : vector<8x32xf32>
    %c0_73 = arith.constant 0 : index
    %c32_74 = arith.constant 32 : index
    %132 = vector.load %arg11[%c0_73, %c32_74] : memref<8x128xf32, #tpu.memory_space<vmem>>, vector<8x32xf32>
    tpu.vector_store %arg11[%c0_73, %c32_74], %131 {strides = array<i32>} : memref<8x128xf32, #tpu.memory_space<vmem>>, vector<8x32xf32>,
    %c0_75 = arith.constant 0 : index
    %c64_76 = arith.constant 64 : index
    %133 = vector.load %arg11[%c0_75, %c64_76] : memref<8x128xf32, #tpu.memory_space<vmem>>, vector<8x32xf32>
    tpu.vector_store %arg11[%c0_75, %c64_76], %105 {strides = array<i32>} : memref<8x128xf32, #tpu.memory_space<vmem>>, vector<8x32xf32>,
    %134 = arith.addf %114, %105 : vector<8x32xf32>
    %c0_77 = arith.constant 0 : index
    %c96 = arith.constant 96 : index
    %135 = vector.load %arg11[%c0_77, %c96] : memref<8x128xf32, #tpu.memory_space<vmem>>, vector<8x32xf32>
    tpu.vector_store %arg11[%c0_77, %c96], %134 {strides = array<i32>} : memref<8x128xf32, #tpu.memory_space<vmem>>, vector<8x32xf32>,
    return
  }
}

</mosaic_0001>

<bundles_post_ra>
// kernel: lspmnet_forward.1
= control target key start
LH: loop header
LB: loop body
LE: loop exit
PB: predicated region body
PF: predicated region fallthrough
CT: control target
= control target key end

     0   :  { %16 = vsyncpa [#allocation4], 0  ;;  %s1251_s0 = inlined_call_operand.vmem [shape: f32[8,32], index: 0, kind: input, shape index: {}]   ;;  %s1252_s1 = inlined_call_operand.hbm [shape: f32[8,32], index: 1, kind: input, shape index: {}]   ;;  %s1253_s2 = inlined_call_operand.hbm [shape: f32[8,32], index: 2, kind: input, shape index: {}]   ;;  %s1254_s3 = inlined_call_operand.vmem [shape: f32[8,32], index: 3, kind: input, shape index: {}]   ;;  %s1255_s4 = inlined_call_operand.hbm [shape: f32[8,32], index: 4, kind: input, shape index: {}]   ;;  %s1256_s5 = inlined_call_operand.hbm [shape: bf16[64,128], index: 5, kind: input, shape index: {}]   ;;  %s1257_s6 = inlined_call_operand.hbm [shape: f32[1,128], index: 6, kind: input, shape index: {}]   ;;  %s1258_s7 = inlined_call_operand.hbm [shape: bf16[96,128], index: 7, kind: input, shape index: {}]   ;;  %s1259_s8 = inlined_call_operand.hbm [shape: f32[1,128], index: 8, kind: input, shape index: {}]   ;;  %s1260_s9 = inlined_call_operand.hbm [shape: bf16[64,64], index: 9, kind: input, shape index: {}]   ;;  %s1261_s10 = inlined_call_operand.hbm [shape: f32[1,64], index: 10, kind: input, shape index: {}]   ;;  %s1262_s11 = inlined_call_operand.vmem [shape: f32[8,128], index: 11, kind: output, shape index: {}]  }
   0x1   :  { %17 = vsyncpa [#allocation6], 0 }
   0x2   :  { %18 = vsyncpa [#allocation9], 0 }
   0x3   :  { %19 = vsyncpa [#allocation12], 0 }
   0x4   :  { %20 = vsyncpa [#allocation15], 0  ;;  %s1038_s17 = smov [#allocation5]   ;;  %s1039_s19 = smov [#allocation8]  }
   0x5   :  { %s39_s18 = sshll.u32 %s1038_s17, 4  ;;  %s60_s20 = sshll.u32 %s1039_s19, 4  ;;  %s40_s18 = int_to_ptr.vmem [resolvable:$true] %s39_s18  ;;  %s61_s20 = int_to_ptr.vmem [resolvable:$true] %s60_s20 }
   0x6   :  { %s856_s21 = scalar_lea.vmem %s40_s18, 128  ;;  %p861_p1 = scmp.lt.s32.totalorder %s40_s18, %s40_s18 }
   0x7   :  { %p857_p0 = scmp.ne.s32.totalorder %s40_s18, %s856_s21  ;;  %p862_p2 = scmp.lt.s32.totalorder %s856_s21, %s856_s21 }
   0x9   :  { %p863_p3 = por %p862_p2, %p861_p1 }
   0xb   :  { %p864_p4 = pnand %p863_p3, %p857_p0 }
   0xd   :  { %867 = shalt.err (!%p864_p4)
}
   0xe   :  { %42 = dma.hbm_to_vmem [thread:$0]  %s1253_s2, 128, %s40_s18, [#allocation6]  }
   0xf   :  { %s876_s24 = scalar_lea.vmem %s61_s20, 512  ;;  %p881_p6 = scmp.lt.s32.totalorder %s61_s20, %s61_s20 }
  0x10   :  { %p877_p5 = scmp.ne.s32.totalorder %s61_s20, %s876_s24  ;;  %p882_p7 = scmp.lt.s32.totalorder %s876_s24, %s876_s24 }
  0x12   :  { %p883_p8 = por %p882_p7, %p881_p6 }
  0x14   :  { %p884_p9 = pnand %p883_p8, %p877_p5 }
  0x16   :  { %887 = shalt.err (!%p884_p9)
}
  0x17   :  { %s1040_s25 = smov 64   ;;  %s1041_s26 = smov 4  }
  0x18   :  { %66 = dma.hbm_to_vmem [thread:$0]  %s1256_s5, 512, %s61_s20, [#allocation9], %s1040_s25, %s1040_s25, %s1041_s26  }
  0x19   :  { %s1042_s29 = smov [#allocation11]   ;;  %s1043_s12 = smov [#allocation14]  }
  0x1a   :  { %s82_s30 = sshll.u32 %s1042_s29, 4  ;;  %s104_s13 = sshll.u32 %s1043_s12, 4  ;;  %s83_s30 = int_to_ptr.vmem [resolvable:$true] %s82_s30  ;;  %s105_s13 = int_to_ptr.vmem [resolvable:$true] %s104_s13 }
  0x1b   :  { %s896_s2 = scalar_lea.vmem %s83_s30, 768  ;;  %p901_p11 = scmp.lt.s32.totalorder %s83_s30, %s83_s30 }
  0x1c   :  { %p897_p10 = scmp.ne.s32.totalorder %s83_s30, %s896_s2  ;;  %p902_p12 = scmp.lt.s32.totalorder %s896_s2, %s896_s2 }
  0x1e   :  { %p903_p13 = por %p902_p12, %p901_p11 }
  0x20   :  { %p904_p0 = pnand %p903_p13, %p897_p10 }
  0x22   :  { %907 = shalt.err (!%p904_p0)
}
  0x23   :  { %88 = dma.hbm_to_vmem [thread:$0]  %s1258_s7, 768, %s83_s30, [#allocation12], %s1040_s25, %s1040_s25, %s1041_s26  }
  0x24   :  { %s916_s5 = scalar_lea.vmem %s105_s13, 512  ;;  %p921_p2 = scmp.lt.s32.totalorder %s105_s13, %s105_s13 }
  0x25   :  { %p917_p1 = scmp.ne.s32.totalorder %s105_s13, %s916_s5  ;;  %p922_p3 = scmp.lt.s32.totalorder %s916_s5, %s916_s5 }
  0x27   :  { %p923_p4 = por %p922_p3, %p921_p2 }
  0x29   :  { %p924_p5 = pnand %p923_p4, %p917_p1 }
  0x2b   :  { %927 = shalt.err (!%p924_p5)
}
  0x2c   :  { %110 = dma.hbm_to_vmem [thread:$0]  %s1260_s9, 512, %s105_s13, [#allocation15], %s1040_s25, %s1040_s25, %s1041_s26  }
  0x2d   :  { %s1044_s18 = smov [#allocation3]   ;;  %s1045_s20 = smov [#allocation7]  }
  0x2e   :  { %s29_s19 = sshll.u32 %s1044_s18, 4  ;;  %s51_s21 = sshll.u32 %s1045_s20, 4  ;;  %s30_s19 = int_to_ptr.vmem [resolvable:$true] %s29_s19  ;;  %s52_s21 = int_to_ptr.vmem [resolvable:$true] %s51_s21 }
  0x2f   :  { %s936_s7 = scalar_lea.vmem %s30_s19, 128  ;;  %p941_p7 = scmp.lt.s32.totalorder %s30_s19, %s30_s19 }
  0x30   :  { %p937_p6 = scmp.ne.s32.totalorder %s30_s19, %s936_s7  ;;  %p942_p8 = scmp.lt.s32.totalorder %s936_s7, %s936_s7 }
  0x32   :  { %p943_p9 = por %p942_p8, %p941_p7 }
  0x34   :  { %p944_p10 = pnand %p943_p9, %p937_p6 }
  0x36   :  { %947 = shalt.err (!%p944_p10)
}
  0x37   :  { %32 = dma.hbm_to_vmem [thread:$0]  %s1252_s1, 128, %s30_s19, [#allocation4]  }
  0x38   :  { %s956_s24 = scalar_lea.vmem %s52_s21, 128  ;;  %p961_p12 = scmp.lt.s32.totalorder %s52_s21, %s52_s21 }
  0x39   :  { %p957_p11 = scmp.ne.s32.totalorder %s52_s21, %s956_s24  ;;  %p962_p13 = scmp.lt.s32.totalorder %s956_s24, %s956_s24 }
  0x3b   :  { %p963_p0 = por %p962_p13, %p961_p12 }
  0x3d   :  { %p964_p1 = pnand %p963_p0, %p957_p11 }
  0x3f   :  { %967 = shalt.err (!%p964_p1)
}
  0x40   :  { %54 = dma.hbm_to_vmem [thread:$0]  %s1255_s4, 128, %s52_s21, [#allocation6]  }
  0x41   :  { %s1046_s27 = smov [#allocation10]   ;;  %s1047_s29 = smov [#allocation13]  }
  0x42   :  { %s73_s28 = sshll.u32 %s1046_s27, 4  ;;  %s95_s30 = sshll.u32 %s1047_s29, 4  ;;  %s74_s28 = int_to_ptr.vmem [resolvable:$true] %s73_s28  ;;  %s96_s30 = int_to_ptr.vmem [resolvable:$true] %s95_s30 }
  0x43   :  { %s976_s12 = scalar_lea.vmem %s74_s28, 16  ;;  %s980_s1 = scalar_lea.vmem %s74_s28, 32 }
  0x44   :  { %p977_p2 = scmp.ne.s32.totalorder %s74_s28, %s976_s12  ;;  %p981_p3 = scmp.lt.s32.totalorder %s74_s28, %s74_s28 }
  0x45   :  { %p982_p4 = scmp.lt.s32.totalorder %s980_s1, %s976_s12 }
  0x47   :  { %p983_p5 = por %p982_p4, %p981_p3 }
  0x49   :  { %p984_p6 = pnand %p983_p5, %p977_p2 }
  0x4b   :  { %987 = shalt.err (!%p984_p6)
}
  0x4c   :  { %76 = dma.hbm_to_vmem [thread:$0]  %s1257_s6, 16, %s74_s28, [#allocation9]  }
  0x4d   :  { %s996_s14 = scalar_lea.vmem %s96_s30, 16  ;;  %s1000_s4 = scalar_lea.vmem %s96_s30, 32 }
  0x4e   :  { %p997_p7 = scmp.ne.s32.totalorder %s96_s30, %s996_s14  ;;  %p1001_p8 = scmp.lt.s32.totalorder %s96_s30, %s96_s30 }
  0x4f   :  { %p1002_p9 = scmp.lt.s32.totalorder %s1000_s4, %s996_s14 }
  0x51   :  { %p1003_p10 = por %p1002_p9, %p1001_p8 }
  0x53   :  { %p1004_p11 = pnand %p1003_p10, %p997_p7 }
  0x55   :  { %1007 = shalt.err (!%p1004_p11)
}
  0x56   :  { %98 = dma.hbm_to_vmem [thread:$0]  %s1259_s8, 16, %s96_s30, [#allocation12]  }
  0x57   :  { %s1048_s16 = smov [#allocation16]  }
  0x58   :  { %s117_s17 = sshll.u32 %s1048_s16, 4  ;;  %s118_s17 = int_to_ptr.vmem [resolvable:$true] %s117_s17 }
  0x59   :  { %s1016_s18 = scalar_lea.vmem %s118_s17, 16  ;;  %s1020_s19 = scalar_lea.vmem %s118_s17, 32 }
  0x5a   :  { %p1017_p12 = scmp.ne.s32.totalorder %s118_s17, %s1016_s18  ;;  %p1021_p13 = scmp.lt.s32.totalorder %s118_s17, %s118_s17 }
  0x5b   :  { %p1022_p0 = scmp.lt.s32.totalorder %s1020_s19, %s1016_s18 }
  0x5d   :  { %p1023_p1 = por %p1022_p0, %p1021_p13 }
  0x5f   :  { %p1024_p2 = pnand %p1023_p1, %p1017_p12 }
  0x61   :  { %1027 = shalt.err (!%p1024_p2)
}
  0x62   :  { %120 = dma.hbm_to_vmem [thread:$0]  %s1261_s10, 16, %s118_s17, [#allocation15]  }
  0x63   :  { %1028 = dma.done.wait [#allocation4], 128  }
  0x64   :  { %1029 = vsyncadd [#allocation4], 4294967168 }
  0x65   :  { %1030 = dma.done.wait [#allocation6], 256  }
  0x66   :  { %1031 = vsyncadd [#allocation6], 4294967040 }
  0x67   :  { %1032 = dma.done.wait [#allocation9], 528  }
  0x68   :  { %1033 = vsyncadd [#allocation9], 4294966768 }
  0x69   :  { %1034 = dma.done.wait [#allocation12], 784  }
  0x6a   :  { %1035 = vsyncadd [#allocation12], 4294966512 }
  0x6b   :  { %1036 = dma.done.wait [#allocation15], 528  }
  0x6c   :  { %1037 = vsyncadd [#allocation15], 4294966768  ;;  %v1049_v0 = vmov 0.0   ;;  %vm1050_vm0 = vmmov 0   ;;  %vm173_vm1 = vcmask 261120   ;;  %v171_v1 = vld [vmem:[%s1254_s3] sm:$0xff]  ;;  %v164_v21 = vlaneseq }
  0x6d   :  { %723 = vmatprep.subr.bf16.mxu0 %v1049_v0  ;;  %735 = vmatprep.subr.bf16.mxu1 %v1049_v0  ;;  %s1051_s21 = smov 32   ;;  %v802_v2 = vld [vmem:[#allocation8 + $0x18] sm:$0xff]   ;;  %v1159_v3 = vld [vmem:[%s1251_s0] sm:$0xff]  ;;  %v803_v4 = vld [vmem:[#allocation8 + $0x10] sm:$0xff]   ;;  %vm179_vm2 = vcmask 523520   ;;  %vm207_vm3 = vcmask 523264  }
  0x6e   :  { %731 = vmatprep.mubr.msk.bf16.mxu0 %vm1050_vm0, %v1049_v0  ;;  %743 = vmatprep.mubr.msk.bf16.mxu1 %vm1050_vm0, %v1049_v0  ;;  %174 = vst.msk [vmem:[#allocation2] sm:$0xff] %vm173_vm1, %v1159_v3  ;;  %v172_v5 = vld [vmem:[#allocation7] sm:$0xff]  ;;  %v804_v6 = vld [vmem:[#allocation8 + $0x8] sm:$0xff]   ;;  %v805_v7 = vld [vmem:[#allocation8] sm:$0xff]   ;;  %v165_v22 = vand.u32 127, %v164_v21  ;;  %vm445_vm7 = vcmask 785920  }
  0x6f   :  { %176 = vrot.lane.b32.xlu0 %v171_v1, %s1051_s21  ;;  %724 = vmatpush3.bf16.msra.mxu0 %v802_v2  ;;  %v1180_v11 = vld [vmem:[#allocation10] ss:$0 sm:$0xff]  ;;  %v279_v33 = vld [vmem:[#allocation3] sm:$0xff]  ;;  %v355_v57 = vld [vmem:[#allocation5] sm:$0xff]  ;;  %vm504_vm8 = vcmask 785408   ;;  %s1052_s0 = smov 96  }
  0x70   :  { %736 = vmatpush3.bf16.msra.mxu1 %v802_v2  ;;  %725 = vmatprep.subr.bf16.mxu0 %v1049_v0  ;;  %vm166_vm4 = vcmp.ge.s32.totalorder %v165_v22, 64  ;;  %vm167_vm5 = vcmp.lt.s32.totalorder %v165_v22, 96  ;;  %v808_v22 = vld [vmem:[#allocation11 + $0x18] sm:$0xff]   ;;  %v809_v23 = vld [vmem:[#allocation11 + $0x10] sm:$0xff]   ;;  %vm663_vm9 = vcmask 1048320  }
  0x71   :  { %737 = vmatprep.subr.bf16.mxu1 %v1049_v0  ;;  %259 = vrot.lane.b32.xlu1 %v172_v5, %s1051_s21  ;;  %vm1183_vm6 = vmand %vm166_vm4, %vm167_vm5 }
  0x73   :  { %726 = vmatpush3.bf16.msra.mxu0 %v803_v4 }
  0x74   :  { %738 = vmatpush3.bf16.msra.mxu1 %v803_v4  ;;  %727 = vmatprep.subr.bf16.mxu0 %v1049_v0 }
  0x75   :  { %739 = vmatprep.subr.bf16.mxu1 %v1049_v0 }
  0x77   :  { %728 = vmatpush3.bf16.msra.mxu0 %v804_v6 }
  0x78   :  { %740 = vmatpush3.bf16.msra.mxu1 %v804_v6  ;;  %729 = vmatprep.subr.bf16.mxu0 %v1049_v0 }
  0x79   :  { %741 = vmatprep.subr.bf16.mxu1 %v1049_v0 }
  0x7b   :  { %730 = vmatpush3.bf16.msra.mxu0 %v805_v7 }
  0x7c   :  { %742 = vmatpush3.bf16.msra.mxu1 %v805_v7  ;;  %747 = vmatprep.subr.bf16.mxu0 %v1049_v0 }
  0x7d   :  { %759 = vmatprep.subr.bf16.mxu1 %v1049_v0 }
  0xe1   :  { %v177_v8 = vpop.permute.xlu0 %176 }
  0xe2   :  { %180 = vst.msk [vmem:[#allocation2] sm:$0xff] %vm179_vm2, %v177_v8 }
  0xe3   :  { %v260_v29 = vpop.permute.xlu1 %259 }
  0xe9   :  { %v181_v9 = vld [vmem:[#allocation2] sm:$0xff] }
  0xea   :  { %v182_v10 = vpack.c.bf16 %v181_v9, %v181_v9  ;;  %280 = vst.msk [vmem:[#allocation2] sm:$0xff] %vm173_vm1, %v279_v33  ;;  %v682_v33 = vld [vmem:[#allocation13] ss:$0 sm:$0xff] }
  0xec   :  { %732 = vmatmul.mubr.msk.bf16.vlgmr.msra.gmra.mxu0 %vm207_vm3, %v182_v10 }
  0xed   :  { %748 = vmatpush3.bf16.msra.mxu0 %v802_v2  ;;  %755 = vmatprep.mubr.msk.bf16.mxu0 %vm1050_vm0, %v1049_v0 }
  0xee   :  { %749 = vmatprep.subr.bf16.mxu0 %v1049_v0 }
  0xf1   :  { %750 = vmatpush3.bf16.msra.mxu0 %v803_v4 }
  0xf2   :  { %751 = vmatprep.subr.bf16.mxu0 %v1049_v0 }
  0xf5   :  { %752 = vmatpush3.bf16.msra.mxu0 %v804_v6 }
  0xf6   :  { %753 = vmatprep.subr.bf16.mxu0 %v1049_v0 }
  0xf9   :  { %754 = vmatpush3.bf16.msra.mxu0 %v805_v7 }
  0xfa   :  { %775 = vmatprep.subr.bf16.mxu0 %v1049_v0 }
 0x1ac   :  { %v245_v12 = vpop.f32.mrf.mxu0 }
 0x1ad   :  { %v246_v13 = vadd.f32 %v1180_v11, %v245_v12 }
 0x1ae   :  { %v733_v14 = vpop.f32.mrf.mxu0 }
 0x1af   :  { %v251_v15 = vsub.f32 0.0, %v246_v13 }
 0x1b0   :  { %v248_v16 = vpop.f32.mrf.mxu0 }
 0x1b1   :  { %v252_v17 = vmul.f32 1.442695, %v251_v15 }
 0x1b2   :  { %v734_v18 = vpop.f32.mrf.mxu0 }
 0x1b3   :  { %816 = vpow2.f32 %v252_v17 }
 0x1b4   :  { %818 = vtanh.f32 %v246_v13 }
 0x1c0   :  { %v817_v19 = vpop.eup %816 }
 0x1c1   :  { %v254_v20 = vadd.f32 1.0, %v817_v19  ;;  %v819_v24 = vpop.eup %818  ;;  %v806_v19 = vld [vmem:[#allocation11 + $0x28] sm:$0xff]  }
 0x1c3   :  { %820 = vrcp.f32 %v254_v20  ;;  %v807_v20 = vld [vmem:[#allocation11 + $0x20] sm:$0xff]  }
 0x1d0   :  { %v821_v25 = vpop.eup %820 }
 0x1d1   :  { %v257_v26 = vsel %vm1183_vm6, %v819_v24, %v821_v25  ;;  %v810_v24 = vld [vmem:[#allocation11 + $0x8] sm:$0xff]   ;;  %v811_v25 = vld [vmem:[#allocation11] sm:$0xff]  }
 0x1d2   :  { %264 = vrot.lane.b32.xlu0 %v257_v26, %s1040_s25  ;;  %v262_v30 = vmul.f32 %v260_v29, %v257_v26 }
 0x244   :  { %v265_v27 = vpop.permute.xlu0 %264 }
 0x245   :  { %v267_v28 = vmul.f32 %v265_v27, %v257_v26 }
 0x247   :  { %269 = vrot.lane.b32.xlu1 %v267_v28, %s1051_s21 }
 0x2b9   :  { %v270_v31 = vpop.permute.xlu1 %269 }
 0x2ba   :  { %v272_v32 = vadd.f32 %v270_v31, %v262_v30 }
 0x2bc   :  { %822 = vtanh.f32 %v272_v32 }
 0x2c9   :  { %v823_v34 = vpop.eup %822 }
 0x2ca   :  { %275 = vrot.lane.b32.xlu0 %v823_v34, %s1040_s25 }
 0x33c   :  { %v276_v35 = vpop.permute.xlu0 %275 }
 0x33d   :  { %v278_v36 = vmul.f32 %v276_v35, %v257_v26 }
 0x33f   :  { %282 = vrot.lane.b32.xlu1 %v278_v36, %s1040_s25 }
 0x3b1   :  { %v283_v37 = vpop.permute.xlu1 %282 }
 0x3b2   :  { %285 = vst.msk [vmem:[#allocation2] sm:$0xff] %vm179_vm2, %v283_v37 }
 0x3b9   :  { %v286_v38 = vld [vmem:[#allocation2] sm:$0xff] }
 0x3ba   :  { %v287_v39 = vpack.c.bf16 %v286_v38, %v286_v38  ;;  %356 = vst.msk [vmem:[#allocation2] sm:$0xff] %vm173_vm1, %v355_v57 }
 0x3bc   :  { %744 = vmatmul.mubr.msk.bf16.vlgmr.msra.gmra.mxu1 %vm207_vm3, %v287_v39 }
 0x3bd   :  { %771 = vmatprep.mubr.msk.bf16.mxu1 %vm1050_vm0, %v1049_v0  ;;  %760 = vmatpush3.bf16.msra.mxu1 %v806_v19 }
 0x3be   :  { %761 = vmatprep.subr.bf16.mxu1 %v1049_v0 }
 0x3c1   :  { %762 = vmatpush3.bf16.msra.mxu1 %v807_v20 }
 0x3c2   :  { %763 = vmatprep.subr.bf16.mxu1 %v1049_v0 }
 0x3c5   :  { %764 = vmatpush3.bf16.msra.mxu1 %v808_v22 }
 0x3c6   :  { %765 = vmatprep.subr.bf16.mxu1 %v1049_v0 }
 0x3c9   :  { %766 = vmatpush3.bf16.msra.mxu1 %v809_v23 }
 0x3ca   :  { %767 = vmatprep.subr.bf16.mxu1 %v1049_v0 }
 0x3cd   :  { %768 = vmatpush3.bf16.msra.mxu1 %v810_v24 }
 0x3ce   :  { %769 = vmatprep.subr.bf16.mxu1 %v1049_v0 }
 0x3d1   :  { %770 = vmatpush3.bf16.msra.mxu1 %v811_v25 }
 0x47c   :  { %v325_v40 = vpop.f32.mrf.mxu1 }
 0x47d   :  { %v326_v41 = vadd.f32 %v1180_v11, %v325_v40 }
 0x47e   :  { %v745_v42 = vpop.f32.mrf.mxu1 }
 0x47f   :  { %v331_v43 = vsub.f32 0.0, %v326_v41 }
 0x480   :  { %v328_v44 = vpop.f32.mrf.mxu1 }
 0x481   :  { %v332_v45 = vmul.f32 1.442695, %v331_v43  ;;  %v812_v44 = vld [vmem:[#allocation14 + $0x18] sm:$0xff]  }
 0x482   :  { %v746_v46 = vpop.f32.mrf.mxu1 }
 0x483   :  { %824 = vpow2.f32 %v332_v45  ;;  %v813_v45 = vld [vmem:[#allocation14 + $0x10] sm:$0xff]   ;;  %v814_v46 = vld [vmem:[#allocation14 + $0x8] sm:$0xff]  }
 0x484   :  { %826 = vtanh.f32 %v326_v41 }
 0x490   :  { %v825_v47 = vpop.eup %824 }
 0x491   :  { %v334_v48 = vadd.f32 1.0, %v825_v47  ;;  %v827_v49 = vpop.eup %826  ;;  %v815_v47 = vld [vmem:[#allocation14] sm:$0xff]  }
 0x493   :  { %828 = vrcp.f32 %v334_v48 }
 0x4a0   :  { %v829_v50 = vpop.eup %828 }
 0x4a1   :  { %v337_v51 = vsel %vm1183_vm6, %v827_v49, %v829_v50 }
 0x4a2   :  { %340 = vrot.lane.b32.xlu0 %v337_v51, %s1040_s25  ;;  %v338_v54 = vmul.f32 %v337_v51, %v272_v32 }
 0x514   :  { %v341_v52 = vpop.permute.xlu0 %340 }
 0x515   :  { %v343_v53 = vmul.f32 %v341_v52, %v337_v51 }
 0x517   :  { %345 = vrot.lane.b32.xlu1 %v343_v53, %s1051_s21 }
 0x589   :  { %v346_v55 = vpop.permute.xlu1 %345 }
 0x58a   :  { %v348_v56 = vadd.f32 %v346_v55, %v338_v54 }
 0x58c   :  { %830 = vtanh.f32 %v348_v56 }
 0x599   :  { %v831_v58 = vpop.eup %830 }
 0x59a   :  { %351 = vrot.lane.b32.xlu0 %v831_v58, %s1040_s25 }
 0x60c   :  { %v352_v59 = vpop.permute.xlu0 %351 }
 0x60d   :  { %v354_v60 = vmul.f32 %v352_v59, %v337_v51 }
 0x60f   :  { %358 = vrot.lane.b32.xlu1 %v354_v60, %s1040_s25 }
 0x681   :  { %v359_v61 = vpop.permute.xlu1 %358 }
 0x682   :  { %361 = vst.msk [vmem:[#allocation2] sm:$0xff] %vm179_vm2, %v359_v61 }
 0x689   :  { %v362_v62 = vld [vmem:[#allocation2] sm:$0xff] }
 0x68a   :  { %v363_v63 = vpack.c.bf16 %v362_v62, %v362_v62 }
 0x68c   :  { %756 = vmatmul.mubr.msk.bf16.vlgmr.msra.gmra.mxu0 %vm207_vm3, %v363_v63 }
 0x68d   :  { %783 = vmatprep.mubr.msk.bf16.mxu0 %vm1050_vm0, %v1049_v0  ;;  %776 = vmatpush3.bf16.msra.mxu0 %v812_v44 }
 0x68e   :  { %777 = vmatprep.subr.bf16.mxu0 %v1049_v0 }
 0x691   :  { %778 = vmatpush3.bf16.msra.mxu0 %v813_v45 }
 0x692   :  { %779 = vmatprep.subr.bf16.mxu0 %v1049_v0 }
 0x695   :  { %780 = vmatpush3.bf16.msra.mxu0 %v814_v46 }
 0x696   :  { %781 = vmatprep.subr.bf16.mxu0 %v1049_v0  ;;  %v690_v0 = vld [vmem:[#allocation16] ss:$0 sm:$0xff] }
 0x699   :  { %782 = vmatpush3.bf16.msra.mxu0 %v815_v47 }
 0x74c   :  { %v401_v1 = vpop.f32.mrf.mxu0 }
 0x74d   :  { %v402_v2 = vadd.f32 %v1180_v11, %v401_v1 }
 0x74e   :  { %v757_v4 = vpop.f32.mrf.mxu0 }
 0x74f   :  { %v407_v5 = vsub.f32 0.0, %v402_v2 }
 0x750   :  { %v404_v6 = vpop.f32.mrf.mxu0 }
 0x751   :  { %v408_v7 = vmul.f32 1.442695, %v407_v5 }
 0x752   :  { %v758_v8 = vpop.f32.mrf.mxu0 }
 0x753   :  { %832 = vpow2.f32 %v408_v7 }
 0x754   :  { %834 = vtanh.f32 %v402_v2 }
 0x760   :  { %v833_v9 = vpop.eup %832 }
 0x761   :  { %v410_v10 = vadd.f32 1.0, %v833_v9  ;;  %v835_v12 = vpop.eup %834 }
 0x763   :  { %836 = vrcp.f32 %v410_v10 }
 0x770   :  { %v837_v13 = vpop.eup %836 }
 0x771   :  { %v413_v14 = vsel %vm1183_vm6, %v835_v12, %v837_v13 }
 0x772   :  { %416 = vrot.lane.b32.xlu0 %v413_v14, %s1040_s25  ;;  %v414_v11 = vmul.f32 %v413_v14, %v348_v56 }
 0x7e4   :  { %v417_v15 = vpop.permute.xlu0 %416 }
 0x7e5   :  { %v419_v16 = vmul.f32 %v417_v15, %v413_v14 }
 0x7e7   :  { %421 = vrot.lane.b32.xlu1 %v419_v16, %s1051_s21 }
 0x859   :  { %v422_v17 = vpop.permute.xlu1 %421 }
 0x85a   :  { %v424_v18 = vadd.f32 %v422_v17, %v414_v11 }
 0x85c   :  { %838 = vtanh.f32 %v424_v18 }
 0x869   :  { %v839_v21 = vpop.eup %838 }
 0x86a   :  { %427 = vrot.lane.b32.xlu0 %v839_v21, %s1040_s25 }
 0x86e   :  { %437 = vrot.lane.b32.xlu0 %v355_v57, %s1051_s21 }
 0x8dc   :  { %v428_v26 = vpop.permute.xlu0 %427 }
 0x8dd   :  { %v430_v27 = vmul.f32 %v428_v26, %v413_v14 }
 0x8df   :  { %432 = vrot.lane.b32.xlu1 %v430_v27, %s1051_s21 }
 0x8e0   :  { %v438_v28 = vpop.permute.xlu0 %437 }
 0x8e3   :  { %442 = vrot.lane.b32.xlu1 %v424_v18, %s1051_s21 }
 0x951   :  { %v433_v29 = vpop.permute.xlu1 %432 }
 0x952   :  { %435 = vst.msk [vmem:[#allocation2] sm:$0xff] %vm173_vm1, %v433_v29 }
 0x953   :  { %440 = vst.msk [vmem:[#allocation2] sm:$0xff] %vm179_vm2, %v438_v28 }
 0x955   :  { %v443_v30 = vpop.permute.xlu1 %442 }
 0x956   :  { %446 = vst.msk [vmem:[#allocation2] sm:$0xff] %vm445_vm7, %v443_v30 }
 0x95d   :  { %v447_v31 = vld [vmem:[#allocation2] sm:$0xff] }
 0x95e   :  { %v448_v32 = vpack.c.bf16 %v447_v31, %v447_v31 }
 0x960   :  { %772 = vmatmul.mubr.msk.bf16.vlgmr.msra.gmra.mxu1 %vm504_vm8, %v448_v32 }
 0xa20   :  { %v542_v34 = vpop.f32.mrf.mxu1 }
 0xa21   :  { %v543_v35 = vadd.f32 %v682_v33, %v542_v34 }
 0xa22   :  { %v773_v36 = vpop.f32.mrf.mxu1 }
 0xa23   :  { %v549_v37 = vsub.f32 0.0, %v543_v35  ;;  %840 = vtanh.f32 %v543_v35  ;;  %v548_v49 = vmax.f32 %v543_v35, 0.0 }
 0xa24   :  { %v545_v38 = vpop.f32.mrf.mxu1 }
 0xa25   :  { %v550_v39 = vmul.f32 1.442695, %v549_v37 }
 0xa26   :  { %v774_v40 = vpop.f32.mrf.mxu1 }
 0xa27   :  { %842 = vpow2.f32 %v550_v39 }
 0xa30   :  { %v841_v41 = vpop.eup %840 }
 0xa31   :  { %563 = vrot.lane.b32.xlu1 %v841_v41, %s1052_s0 }
 0xa34   :  { %v843_v42 = vpop.eup %842 }
 0xa35   :  { %v552_v43 = vadd.f32 1.0, %v843_v42 }
 0xa37   :  { %844 = vrcp.f32 %v552_v43 }
 0xa44   :  { %v845_v48 = vpop.eup %844 }
 0xa45   :  { %655 = vrot.lane.b32.xlu1 %v845_v48, %s1051_s21  ;;  %556 = vrot.lane.b32.xlu0 %v845_v48, %s1052_s0 }
 0xa49   :  { %659 = vrot.lane.b32.xlu0 %v845_v48, %s1040_s25 }
 0xaa3   :  { %v564_v53 = vpop.permute.xlu1 %563 }
 0xab7   :  { %v557_v50 = vpop.permute.xlu0 %556  ;;  %v656_v63 = vpop.permute.xlu1 %655 }
 0xab8   :  { %v559_v51 = vmul.f32 %v557_v50, %v548_v49 }
 0xaba   :  { %v560_v52 = vadd.f32 %v559_v51, %v1159_v3 }
 0xabb   :  { %v660_v61 = vpop.permute.xlu0 %659 }
 0xabc   :  { %561 = vst.msk [vmem:[#allocation2] sm:$0xff] %vm173_vm1, %v560_v52  ;;  %v662_v1 = vadd.f32 %v845_v48, %v660_v61 }
 0xabd   :  { %566 = vst.msk [vmem:[#allocation2] sm:$0xff] %vm179_vm2, %v564_v53 }
 0xac4   :  { %v567_v54 = vld [vmem:[#allocation2] sm:$0xff] }
 0xac5   :  { %v568_v55 = vpack.c.bf16 %v567_v54, %v567_v54 }
 0xac7   :  { %784 = vmatmul.mubr.msk.bf16.vlgmr.msra.gmra.mxu0 %vm207_vm3, %v568_v55 }
 0xb87   :  { %v645_v56 = vpop.f32.mrf.mxu0 }
 0xb88   :  { %v646_v57 = vadd.f32 %v690_v0, %v645_v56 }
 0xb89   :  { %v785_v58 = vpop.f32.mrf.mxu0 }
 0xb8a   :  { %v651_v59 = vmax.f32 %v646_v57, 0.0  ;;  %846 = vtanh.f32 %v646_v57 }
 0xb8b   :  { %v648_v60 = vpop.f32.mrf.mxu0 }
 0xb8c   :  { %652 = vst.msk [vmem:[%s1262_s11] sm:$0xff] %vm173_vm1, %v651_v59 }
 0xb8d   :  { %v786_v3 = vpop.f32.mrf.mxu0 }
 0xb97   :  { %v847_v62 = vpop.eup %846 }
 0xb98   :  { %654 = vst.msk [vmem:[%s1262_s11] sm:$0xff] %vm179_vm2, %v847_v62 }
 0xb99   :  { %658 = vst.msk [vmem:[%s1262_s11] sm:$0xff] %vm445_vm7, %v656_v63 }
 0xb9a   :  { %664 = vst.msk [vmem:[%s1262_s11] sm:$0xff] %vm663_vm9, %v662_v1 }
 0xb9b   :  { %669 = vsyncpa [#allocation4], 1 }
 0xb9c   :  { %670 = vsyncpa [#allocation6], 1 }
 0xb9d   :  { %671 = vsyncpa [#allocation9], 1 }
 0xb9e   :  { %672 = vsyncpa [#allocation12], 1 }
 0xb9f   :  { %673 = vsyncpa [#allocation15], 1 }

</bundles_post_ra>
